<compile_context>
chip_gen: v5e
topology: v5e:2x2
jax: 0.10.0
libtpu: 0.0.40
codegen_flags: <defaults>
</compile_context>

<pallas_src>
import functools

import numpy as np
import jax
import jax.numpy as jnp
from jax.experimental import pallas as pl
from jax.experimental.pallas import tpu as pltpu


def _round_up(x, m):
    return (x + m - 1) // m * m


def _features_linear_kernel(x_ref, table_ref, bias_ref, out_ref, *,
                            pad_starts, pad_sizes, out_dim):
    # x_ref:     (F, TB)     int32  per-field LOCAL ids, batch on the lane axis
    # table_ref: (V_pad, D)  table rows in the per-field 8-aligned padded layout
    # bias_ref:  (D,)        float32 in SMEM
    # out_ref:   (D, TB)     float32, batch on the lane axis (lane-dense stores)
    num_fields, tb = x_ref.shape

    for d in range(out_dim):                      # static, tiny (output_dim == 1)
        acc = jnp.zeros((1, tb), jnp.float32)
        for f in range(num_fields):               # static, small field loop
            start = pad_starts[f]                 # static 8-aligned sublane offset
            size = pad_sizes[f]                   # static 8-aligned slice size
            x_f = x_ref[pl.ds(f, 1), :]           # (1, TB) local ids of field f
            local_ids = jax.lax.broadcasted_iota(jnp.int32, (size, tb), 0)
            # Field's own table slice, (size, 1); lane-broadcast inside the select.
            tbl = table_ref[pl.ds(start, size), pl.ds(d, 1)].astype(jnp.float32)
            sel = jnp.where(local_ids == x_f, tbl, 0.0)          # (size, TB), VPU
            acc = acc + jnp.sum(sel, axis=0, keepdims=True)      # XLU sublane reduce
        out_ref[pl.ds(d, 1), :] = acc + bias_ref[d]              # SMEM scalar bias


def features_linear(x, table, bias, field_dims, *, block_batch=None):
    """Forward of FeaturesLinear.

    x:     (B, F) integer per-field LOCAL category ids (offsets are handled here)
    table: (V, D) embedding table, V = sum(field_dims)
    bias:  (D,)
    returns (B, D) float32
    """
    field_dims = tuple(int(d) for d in field_dims)
    num_fields = len(field_dims)
    B = x.shape[0]
    V, D = table.shape
    assert V == sum(field_dims) and x.shape[1] == num_fields

    if block_batch is None:
        block_batch = 512 if B >= 512 else 128
    TB = block_batch
    B_pad = _round_up(max(B, TB), TB)

    # Original offsets (start row of each field in the unpadded table).
    offsets = [0]
    for d in field_dims[:-1]:
        offsets.append(offsets[-1] + d)

    # Padded, per-field 8-sublane-aligned table layout: field f occupies rows
    # [pad_starts[f], pad_starts[f] + field_dims[f]); extra rows are zero.
    pad_sizes = [_round_up(d, 8) for d in field_dims]
    pad_starts = [0]
    for s in pad_sizes[:-1]:
        pad_starts.append(pad_starts[-1] + s)
    V_pad = sum(pad_sizes)

    table_pad = jnp.zeros((V_pad, D), table.dtype)
    for f, dim_f in enumerate(field_dims):
        table_pad = table_pad.at[pad_starts[f]:pad_starts[f] + dim_f].set(
            table[offsets[f]:offsets[f] + dim_f])

    # x -> (F, B_pad) int32, batch on lanes. No offset add needed: the offsets are
    # baked into the static padded table layout used by the kernel.
    x_t = jnp.zeros((num_fields, B_pad), jnp.int32)
    x_t = x_t.at[:, :B].set(jnp.asarray(x, jnp.int32).T)

    bias_f32 = jnp.asarray(bias, jnp.float32).reshape(D)

    kernel = functools.partial(
        _features_linear_kernel,
        pad_starts=tuple(pad_starts),
        pad_sizes=tuple(pad_sizes),
        out_dim=D,
    )

    out_t = pl.pallas_call(
        kernel,
        out_shape=jax.ShapeDtypeStruct((D, B_pad), jnp.float32),
        grid=(B_pad // TB,),
        in_specs=[
            # Per-batch-tile block of indices (lane-dense, F on sublanes).
            pl.BlockSpec((num_fields, TB), lambda i: (0, i)),
            # Full table, constant index_map -> DMA'd once, VMEM-resident.
            pl.BlockSpec((V_pad, D), lambda i: (0, 0)),
            # Bias scalars in SMEM (no padded VMEM tile, no per-step DMA cost).
            pl.BlockSpec(memory_space=pltpu.MemorySpace.SMEM),
        ],
        out_specs=pl.BlockSpec((D, TB), lambda i: (0, i)),
        compiler_params=pltpu.CompilerParams(
            dimension_semantics=("parallel",),        # v7x: split batch tiles over 2 TCs
            vmem_limit_bytes=32 * 1024 * 1024,        # explicit; fits v7x's 64 MiB VMEM
        ),
    )(x_t, table_pad, bias_f32)

    # (D, B_pad) lane-dense result -> (B, D); pure layout plumbing.
    return out_t[:, :B].T


if __name__ == "__main__":
    # Module config (small, consistent with FeaturesLinear.__init__).
    field_dims = (3, 5, 7, 11)       # num_fields = 4
    output_dim = 1
    vocab = sum(field_dims)          # 26
    batch = 8

    key = jax.random.PRNGKey(0)
    k_tab, k_x = jax.random.split(key)

    # nn.Embedding default init ~ N(0, 1); bias zeros.
    table = jax.random.normal(k_tab, (vocab, output_dim), dtype=jnp.float32)
    bias = jnp.zeros((output_dim,), dtype=jnp.float32)

    # Input: per-field local category ids in [0, field_dims[f]).
    maxs = jnp.array(field_dims, dtype=jnp.int32)
    x = (jax.random.randint(k_x, (batch, len(field_dims)), 0, 1_000_000)
         % maxs).astype(jnp.int32)

    out = features_linear(x, table, bias, field_dims)
    out = jax.block_until_ready(out)

    # Pure-JAX reference of the PyTorch forward.
    offsets = jnp.array((0, *np.cumsum(field_dims)[:-1]), dtype=jnp.int32)
    x_off = x + offsets[None, :]
    ref = table[x_off].sum(axis=1) + bias[None, :]

    assert out.shape == (batch, output_dim), out.shape
    assert jnp.allclose(out, ref, atol=1e-5), (out, ref)
    print("KERNEL_OK")
</pallas_src>

<mosaic_0001>
module attributes {stable_mosaic.version = 11 : i64} {
  func.func @_features_linear_kernel(%arg0: i32, %arg1: memref<4x128xi32, #tpu.memory_space<vmem>>, %arg2: memref<40x1xf32, #tpu.memory_space<vmem>>, %arg3: memref<1xf32, #tpu.memory_space<smem>>, %arg4: memref<1x128xf32, #tpu.memory_space<vmem>>) attributes {dimension_semantics = [#tpu.dimension_semantics<parallel>], iteration_bounds = array<i64: 1>, scalar_prefetch = 0 : i64, scratch_operands = 0 : i64, tpu.core_type = #tpu.core_type<tc>, window_params = [{transform_indices = @transform_0, window_bounds = array<i64: 4, 128>}, {pipeline_mode = #tpu.pipeline_mode<synchronous>, transform_indices = @transform_1, window_bounds = array<i64: 40, 1>}, {transform_indices = @transform_2, window_bounds = array<i64: 1>}, {transform_indices = @transform_3, window_bounds = array<i64: 1, 128>}]} {
    %cst = arith.constant 0.000000e+00 : f32
    %0 = vector.broadcast %cst : f32 to vector<1x128xf32>
    %c0 = arith.constant 0 : index
    %c0_0 = arith.constant 0 : index
    %1 = vector.load %arg1[%c0, %c0_0] : memref<4x128xi32, #tpu.memory_space<vmem>>, vector<1x128xi32>
    %2 = tpu.iota {dimensions = array<i32: 0>} : vector<8x128xi32>
    %c0_1 = arith.constant 0 : index
    %c0_2 = arith.constant 0 : index
    %3 = vector.load %arg2[%c0_1, %c0_2] : memref<40x1xf32, #tpu.memory_space<vmem>>, vector<8x1xf32>
    %4 = vector.broadcast %1 : vector<1x128xi32> to vector<8x128xi32>
    %5 = arith.cmpi eq, %2, %4 : vector<8x128xi32>
    %cst_3 = arith.constant 0.000000e+00 : f32
    %6 = vector.shape_cast %3 : vector<8x1xf32> to vector<8x1xf32>
    %7 = vector.broadcast %6 : vector<8x1xf32> to vector<8x128xf32>
    %8 = vector.broadcast %cst_3 : f32 to vector<8x128xf32>
    %9 = arith.select %5, %7, %8 : vector<8x128xi1>, vector<8x128xf32>
    %cst_4 = arith.constant dense<0.000000e+00> : vector<128xf32>
    %10 = vector.multi_reduction <add>, %9, %cst_4 [0] : vector<8x128xf32> to vector<128xf32>
    %11 = vector.shape_cast %10 : vector<128xf32> to vector<1x128xf32>
    %12 = arith.addf %0, %11 : vector<1x128xf32>
    %c1 = arith.constant 1 : index
    %c0_5 = arith.constant 0 : index
    %13 = vector.load %arg1[%c1, %c0_5] : memref<4x128xi32, #tpu.memory_space<vmem>>, vector<1x128xi32>
    %14 = tpu.iota {dimensions = array<i32: 0>} : vector<8x128xi32>
    %c8 = arith.constant 8 : index
    %c0_6 = arith.constant 0 : index
    %15 = vector.load %arg2[%c8, %c0_6] : memref<40x1xf32, #tpu.memory_space<vmem>>, vector<8x1xf32>
    %16 = vector.broadcast %13 : vector<1x128xi32> to vector<8x128xi32>
    %17 = arith.cmpi eq, %14, %16 : vector<8x128xi32>
    %cst_7 = arith.constant 0.000000e+00 : f32
    %18 = vector.shape_cast %15 : vector<8x1xf32> to vector<8x1xf32>
    %19 = vector.broadcast %18 : vector<8x1xf32> to vector<8x128xf32>
    %20 = vector.broadcast %cst_7 : f32 to vector<8x128xf32>
    %21 = arith.select %17, %19, %20 : vector<8x128xi1>, vector<8x128xf32>
    %cst_8 = arith.constant dense<0.000000e+00> : vector<128xf32>
    %22 = vector.multi_reduction <add>, %21, %cst_8 [0] : vector<8x128xf32> to vector<128xf32>
    %23 = vector.shape_cast %22 : vector<128xf32> to vector<1x128xf32>
    %24 = arith.addf %12, %23 : vector<1x128xf32>
    %c2 = arith.constant 2 : index
    %c0_9 = arith.constant 0 : index
    %25 = vector.load %arg1[%c2, %c0_9] : memref<4x128xi32, #tpu.memory_space<vmem>>, vector<1x128xi32>
    %26 = tpu.iota {dimensions = array<i32: 0>} : vector<8x128xi32>
    %c16 = arith.constant 16 : index
    %c0_10 = arith.constant 0 : index
    %27 = vector.load %arg2[%c16, %c0_10] : memref<40x1xf32, #tpu.memory_space<vmem>>, vector<8x1xf32>
    %28 = vector.broadcast %25 : vector<1x128xi32> to vector<8x128xi32>
    %29 = arith.cmpi eq, %26, %28 : vector<8x128xi32>
    %cst_11 = arith.constant 0.000000e+00 : f32
    %30 = vector.shape_cast %27 : vector<8x1xf32> to vector<8x1xf32>
    %31 = vector.broadcast %30 : vector<8x1xf32> to vector<8x128xf32>
    %32 = vector.broadcast %cst_11 : f32 to vector<8x128xf32>
    %33 = arith.select %29, %31, %32 : vector<8x128xi1>, vector<8x128xf32>
    %cst_12 = arith.constant dense<0.000000e+00> : vector<128xf32>
    %34 = vector.multi_reduction <add>, %33, %cst_12 [0] : vector<8x128xf32> to vector<128xf32>
    %35 = vector.shape_cast %34 : vector<128xf32> to vector<1x128xf32>
    %36 = arith.addf %24, %35 : vector<1x128xf32>
    %c3 = arith.constant 3 : index
    %c0_13 = arith.constant 0 : index
    %37 = vector.load %arg1[%c3, %c0_13] : memref<4x128xi32, #tpu.memory_space<vmem>>, vector<1x128xi32>
    %38 = tpu.iota {dimensions = array<i32: 0>} : vector<16x128xi32>
    %c24 = arith.constant 24 : index
    %c0_14 = arith.constant 0 : index
    %39 = vector.load %arg2[%c24, %c0_14] : memref<40x1xf32, #tpu.memory_space<vmem>>, vector<16x1xf32>
    %40 = vector.broadcast %37 : vector<1x128xi32> to vector<16x128xi32>
    %41 = arith.cmpi eq, %38, %40 : vector<16x128xi32>
    %cst_15 = arith.constant 0.000000e+00 : f32
    %42 = vector.shape_cast %39 : vector<16x1xf32> to vector<16x1xf32>
    %43 = vector.broadcast %42 : vector<16x1xf32> to vector<16x128xf32>
    %44 = vector.broadcast %cst_15 : f32 to vector<16x128xf32>
    %45 = arith.select %41, %43, %44 : vector<16x128xi1>, vector<16x128xf32>
    %cst_16 = arith.constant dense<0.000000e+00> : vector<128xf32>
    %46 = vector.multi_reduction <add>, %45, %cst_16 [0] : vector<16x128xf32> to vector<128xf32>
    %47 = vector.shape_cast %46 : vector<128xf32> to vector<1x128xf32>
    %48 = arith.addf %36, %47 : vector<1x128xf32>
    %c0_17 = arith.constant 0 : index
    %49 = memref.load %arg3[%c0_17] : memref<1xf32, #tpu.memory_space<smem>>
    %50 = vector.broadcast %49 : f32 to vector<1x128xf32>
    %51 = arith.addf %48, %50 : vector<1x128xf32>
    %c0_18 = arith.constant 0 : index
    %c0_19 = arith.constant 0 : index
    %52 = vector.load %arg4[%c0_18, %c0_19] : memref<1x128xf32, #tpu.memory_space<vmem>>, vector<1x128xf32>
    tpu.vector_store %arg4[%c0_18, %c0_19], %51 {strides = array<i32>} : memref<1x128xf32, #tpu.memory_space<vmem>>, vector<1x128xf32>,
    return
  }
  func.func @transform_0(%arg0: i32) -> (i32, i32) {
    %c0_i32 = arith.constant 0 : i32
    %c0_i32_0 = arith.constant 0 : i32
    return %c0_i32, %arg0 : i32, i32
  }
  func.func @transform_1(%arg0: i32) -> (i32, i32) {
    %c0_i32 = arith.constant 0 : i32
    %c0_i32_0 = arith.constant 0 : i32
    %c0_i32_1 = arith.constant 0 : i32
    return %c0_i32, %c0_i32_0 : i32, i32
  }
  func.func @transform_2(%arg0: i32) -> i32 {
    %c0_i32 = arith.constant 0 : i32
    %c0_i32_0 = arith.constant 0 : i32
    return %c0_i32 : i32
  }
  func.func @transform_3(%arg0: i32) -> (i32, i32) {
    %c0_i32 = arith.constant 0 : i32
    %c0_i32_0 = arith.constant 0 : i32
    return %c0_i32, %arg0 : i32, i32
  }
}

</mosaic_0001>

<bundles_post_ra>
// kernel: tpu_custom_call.1
= control target key start
LH: loop header
LB: loop body
LE: loop exit
PB: predicated region body
PF: predicated region fallthrough
CT: control target
= control target key end

     0   :  { %v151_v2 = vmov 0   ;;  %s206_s0 = inlined_call_operand.vmem [shape: s32[4,128], index: 0, kind: input, shape index: {}]   ;;  %s207_s1 = inlined_call_operand.vmem [shape: f32[40,1], index: 1, kind: input, shape index: {}]   ;;  %s208_s2 = inlined_call_operand.<no memory space> [shape: f32[1], index: 2, kind: input, shape index: {}]   ;;  %s209_s3 = inlined_call_operand.hbm [shape: f32[1,128], index: 3, kind: output, shape index: {}]  }
   0x1   :  { %v53_v0 = vld [vmem:[%s207_s1 + $0x10] sm:$0xff]  ;;  %v19_v1 = vld [vmem:[%s207_s1] sm:$0xff]  ;;  %119 = vset.pattern.permute.xlu1 %v151_v2  ;;  %118 = vset.pattern.permute.xlu0 %v151_v2 }
   0x2   :  { %v72_v3 = vld [vmem:[%s207_s1 + $0x20] sm:$0xff]  ;;  %58 = vperm.xlu1 %119, %v53_v0   ;;  %24 = vperm.xlu0 %118, %v19_v1  }
   0x3   :  { %120 = vset.pattern.permute.xlu2 %v151_v2 }
   0x4   :  { %9 = vsyncpa [#allocation4], 0  ;;  %83 = vperm.xlu2 %120, %v72_v3   ;;  %v71_v4 = vld [vmem:[%s207_s1 + $0x18] sm:$0xff]  ;;  %v36_v5 = vld [vmem:[%s207_s1 + $0x8] sm:$0xff]  ;;  %v17_v6 = vlaneseq  ;;  %v97_v50 = vstv %s208_s2  ;;  %s152_s30 = smov [#allocation3]   ;;  %s107_s7 = sshll.u32 %s209_s3, 4  ;;  %s108_s7 = int_to_ptr.hbm [resolvable:$true] %s107_s7 }
   0x5   :  { %v121_v7 = vld [vmem:[%s206_s0 + $0x2] ss:$0 sm:$0xff]  ;;  %v122_v9 = vld [vmem:[%s206_s0] ss:$0 sm:$0xff]  ;;  %v123_v12 = vld [vmem:[%s206_s0 + $0x3] ss:$0 sm:$0xff] }
   0x6   :  { %v18_v8 = vshrl.u32 %v17_v6, 7  ;;  %v124_v18 = vld [vmem:[%s206_s0 + $0x1] ss:$0 sm:$0xff]  ;;  %s105_s4 = sshll.u32 %s152_s30, 4  ;;  %s106_s4 = int_to_ptr.vmem [resolvable:$true] %s105_s4 }
   0x8   :  { %vm55_vm0 = vcmp.eq.s32.totalorder %v18_v8, %v121_v7  ;;  %vm21_vm1 = vcmp.eq.s32.totalorder %v18_v8, %v122_v9  ;;  %v70_v13 = vadd.s32 8, %v18_v8  ;;  %vm74_vm3 = vcmp.eq.s32.totalorder %v18_v8, %v123_v12 }
   0x9   :  { %vm38_vm4 = vcmp.eq.s32.totalorder %v18_v8, %v124_v18 }
   0xa   :  { %78 = vperm.xlu1 %119, %v71_v4   ;;  %41 = vperm.xlu0 %118, %v36_v5   ;;  %vm75_vm2 = vcmp.eq.s32.totalorder %v70_v13, %v123_v12 }
  0x5e   :  { %v84_v20 = vpop.permute.xlu2 %83 }
  0x5f   :  { %v87_v22 = vsel %vm75_vm2, %v84_v20, 0.0 }
  0x74   :  { %v59_v10 = vpop.permute.xlu1 %58  ;;  %v25_v11 = vpop.permute.xlu0 %24 }
  0x75   :  { %v61_v14 = vsel %vm55_vm0, %v59_v10, 0.0  ;;  %v27_v15 = vsel %vm21_vm1, %v25_v11, 0.0 }
  0x76   :  { %v62_v16 = vrot.slane %v61_v14, 4  ;;  %v28_v17 = vrot.slane %v27_v15, 4 }
  0x78   :  { %v29_v19 = vadd.f32 %v28_v17, %v27_v15  ;;  %v63_v21 = vadd.f32 %v62_v16, %v61_v14 }
  0x7a   :  { %v30_v23 = vrot.slane %v29_v19, 2  ;;  %v64_v28 = vrot.slane %v63_v21, 2 }
  0x7c   :  { %v79_v24 = vpop.permute.xlu1 %78  ;;  %v42_v25 = vpop.permute.xlu0 %41  ;;  %v31_v31 = vadd.f32 %v30_v23, %v29_v19  ;;  %v65_v34 = vadd.f32 %v64_v28, %v63_v21 }
  0x7d   :  { %v86_v26 = vsel %vm74_vm3, %v79_v24, 0.0  ;;  %v44_v27 = vsel %vm38_vm4, %v42_v25, 0.0 }
  0x7e   :  { %v88_v29 = vadd.f32 %v87_v22, %v86_v26  ;;  %v45_v30 = vrot.slane %v44_v27, 4  ;;  %v32_v37 = vrot.slane %v31_v31, 1  ;;  %v66_v40 = vrot.slane %v65_v34, 1 }
  0x80   :  { %v89_v32 = vrot.slane %v88_v29, 4  ;;  %v46_v33 = vadd.f32 %v45_v30, %v44_v27  ;;  %v33_v43 = vadd.f32 %v32_v37, %v31_v31  ;;  %v67_v46 = vadd.f32 %v66_v40, %v65_v34 }
  0x82   :  { %v90_v35 = vadd.f32 %v89_v32, %v88_v29  ;;  %v47_v36 = vrot.slane %v46_v33, 2 }
  0x84   :  { %v91_v38 = vrot.slane %v90_v35, 2  ;;  %v48_v39 = vadd.f32 %v47_v36, %v46_v33 }
  0x86   :  { %v92_v41 = vadd.f32 %v91_v38, %v90_v35  ;;  %v49_v42 = vrot.slane %v48_v39, 1 }
  0x88   :  { %v93_v44 = vrot.slane %v92_v41, 1  ;;  %v50_v45 = vadd.f32 %v49_v42, %v48_v39 }
  0x8a   :  { %v51_v47 = vadd.f32 %v50_v45, %v33_v43  ;;  %v94_v48 = vadd.f32 %v93_v44, %v92_v41 }
  0x8c   :  { %v68_v49 = vadd.f32 %v67_v46, %v51_v47 }
  0x8e   :  { %v95_v51 = vadd.f32 %v94_v48, %v68_v49 }
  0x90   :  { %v98_v52 = vadd.f32 %v97_v50, %v95_v51 }
  0x92   :  { %99 = vst [vmem:[#allocation3] sm:$0x1] %v98_v52 }
  0x93   :  { %110 = dma.vmem_to_hbm [thread:$0]  %s106_s4, 16, %s108_s7, [#allocation4]  }
  0x94   :  { %149 = dma.done.wait [#allocation4], 16  }
  0x95   :  { %150 = vsyncadd [#allocation4], 4294967280 }
  0x96   :  { %115 = vsyncpa [#allocation4], 1 }

</bundles_post_ra>
